<compile_context>
chip_gen: v5e
topology: v5e:2x2
jax: 0.10.0
libtpu: 0.0.40
codegen_flags: <defaults>
</compile_context>

<pallas_src>
import jax
import jax.numpy as jnp
from jax.experimental import pallas as pl
from jax.experimental.pallas import tpu as pltpu


_LANES = 128
_SUBLANES = 8
# ~4 MiB of payload per block, independent of dtype (8192 rows f32 / 16384
# rows bf16).  in + out, double-buffered => at most 16 MiB of scoped VMEM.
_TARGET_BLOCK_BYTES = 4 * 1024 * 1024
_VMEM_LIMIT_BYTES = 32 * 1024 * 1024
# If a single-block input carries at least this much data, split it into two
# grid steps so both v7x TensorCores are fed.
_SPLIT_THRESHOLD_BYTES = 1 * 1024 * 1024


def _sigmoid_kernel(x_ref, o_ref):
    # Upcast on the vreg only; HBM-side dtype stays native.
    x = x_ref[...].astype(jnp.float32)
    # sigmoid(x) = 0.5 * tanh(0.5 * x) + 0.5  -> exactly one EUP transcendental
    # per element; the scale/shift are VPU ops in otherwise-free slots.
    y = 0.5 * jnp.tanh(0.5 * x) + 0.5
    o_ref[...] = y.astype(o_ref.dtype)


def _pick_tile_rows(rows: int, itemsize: int) -> int:
    """Rows per block: <= ~4 MiB per buffer, multiple of 8, >= 2 steps when big."""
    bytes_per_row = itemsize * _LANES
    max_rows = max(
        (_TARGET_BLOCK_BYTES // bytes_per_row) // _SUBLANES * _SUBLANES,
        _SUBLANES,
    )
    if rows > max_rows:
        return max_rows  # cdiv grid >= 2, both v7x TCs busy
    # Fits in a single block.  Split into two steps only if the payload is big
    # enough that feeding the second v7x TensorCore beats the 0.35 us step cost.
    if rows >= 2 * _SUBLANES and rows * bytes_per_row >= _SPLIT_THRESHOLD_BYTES:
        half = -(-rows // 2)
        return -(-half // _SUBLANES) * _SUBLANES
    return rows  # single full-extent block (legal even if rows % 8 != 0)


def tudui_forward(x: jax.Array) -> jax.Array:
    """Elementwise sigmoid (PyTorch `Tudui.forward`) as a Pallas TPU kernel."""
    orig_shape = x.shape
    dtype = x.dtype
    total = x.size

    if total == 0:  # degenerate shape guard
        return x

    xf = jnp.ravel(x)  # contiguous reshape: metadata-only, no extra HBM pass
    body_total = (total // _LANES) * _LANES
    tail_total = total - body_total

    pieces = []

    if body_total:
        rows = body_total // _LANES
        itemsize = jnp.dtype(dtype).itemsize
        tile_rows = _pick_tile_rows(rows, itemsize)
        grid = (pl.cdiv(rows, tile_rows),)

        body2d = xf[:body_total].reshape(rows, _LANES)
        out2d = pl.pallas_call(
            _sigmoid_kernel,
            out_shape=jax.ShapeDtypeStruct((rows, _LANES), dtype),
            grid_spec=pltpu.PrefetchScalarGridSpec(
                num_scalar_prefetch=0,
                grid=grid,
                # NOTE: pipeline_mode=pl.Buffered(3) is a possible 0-5% win on
                # v7x; left at the default depth of 2 (already HBM-bound).
                in_specs=[pl.BlockSpec((tile_rows, _LANES), lambda i: (i, 0))],
                out_specs=pl.BlockSpec((tile_rows, _LANES), lambda i: (i, 0)),
            ),
            compiler_params=pltpu.CompilerParams(
                dimension_semantics=("parallel",),
                vmem_limit_bytes=_VMEM_LIMIT_BYTES,
            ),
        )(body2d)
        pieces.append(out2d.reshape(body_total))

    if tail_total:
        # Fewer than 128 leftover elements: compute them inline with the same
        # formula instead of padding/slicing the full array through HBM.
        # TODO(synk): fold this tail into the last grid step with a masked
        # store to make the odd-size case a strict 1x-read / 1x-write stream.
        tail = xf[body_total:].astype(jnp.float32)
        pieces.append((0.5 * jnp.tanh(0.5 * tail) + 0.5).astype(dtype))

    out = pieces[0] if len(pieces) == 1 else jnp.concatenate(pieces)
    return out.reshape(orig_shape)


if __name__ == "__main__":
    key = jax.random.PRNGKey(0)
    # Small NCHW input consistent with the module's intended use (images).
    x = jax.random.normal(key, (2, 4, 16, 16), dtype=jnp.float32)

    y = tudui_forward(x)
    jax.block_until_ready(y)

    # Sanity check against the pure-JAX reference (tanh-form differs from the
    # exp-form by a few ULPs, so tolerances are loosened slightly vs 1e-6).
    y_ref = jax.nn.sigmoid(x)
    assert y.shape == x.shape and y.dtype == x.dtype
    assert jnp.allclose(y, y_ref, atol=1e-5, rtol=1e-5)

    # Native-dtype path: bf16 stays bf16 in HBM, f32 math only on the vreg.
    xb = x.astype(jnp.bfloat16)
    yb = tudui_forward(xb)
    jax.block_until_ready(yb)
    assert yb.shape == x.shape and yb.dtype == jnp.bfloat16
    assert jnp.allclose(yb.astype(jnp.float32), y_ref, atol=1e-2)

    # Odd element count (total % 128 != 0): body kernel + inline tail path.
    xo = jax.random.normal(jax.random.PRNGKey(1), (5, 100), dtype=jnp.float32)
    yo = tudui_forward(xo)
    jax.block_until_ready(yo)
    assert yo.shape == xo.shape
    assert jnp.allclose(yo, jax.nn.sigmoid(xo), atol=1e-5, rtol=1e-5)

    print("KERNEL_OK")
</pallas_src>

<mosaic_0001>
module attributes {stable_mosaic.version = 11 : i64} {
  func.func @_sigmoid_kernel(%arg0: i32, %arg1: memref<16x128xf32, #tpu.memory_space<vmem>>, %arg2: memref<16x128xf32, #tpu.memory_space<vmem>>) attributes {dimension_semantics = [#tpu.dimension_semantics<parallel>], iteration_bounds = array<i64: 1>, scalar_prefetch = 0 : i64, scratch_operands = 0 : i64, tpu.core_type = #tpu.core_type<tc>, window_params = [{transform_indices = @transform_0, window_bounds = array<i64: 16, 128>}, {transform_indices = @transform_1, window_bounds = array<i64: 16, 128>}]} {
    %c0 = arith.constant 0 : index
    %c0_0 = arith.constant 0 : index
    %0 = vector.load %arg1[%c0, %c0_0] : memref<16x128xf32, #tpu.memory_space<vmem>>, vector<16x128xf32>
    %cst = arith.constant 5.000000e-01 : f32
    %1 = vector.broadcast %cst : f32 to vector<16x128xf32>
    %2 = arith.mulf %1, %0 : vector<16x128xf32>
    %3 = math.tanh %2 : vector<16x128xf32>
    %cst_1 = arith.constant 5.000000e-01 : f32
    %4 = vector.broadcast %cst_1 : f32 to vector<16x128xf32>
    %5 = arith.mulf %4, %3 : vector<16x128xf32>
    %cst_2 = arith.constant 5.000000e-01 : f32
    %6 = vector.broadcast %cst_2 : f32 to vector<16x128xf32>
    %7 = arith.addf %5, %6 : vector<16x128xf32>
    %c0_3 = arith.constant 0 : index
    %c0_4 = arith.constant 0 : index
    %8 = vector.load %arg2[%c0_3, %c0_4] : memref<16x128xf32, #tpu.memory_space<vmem>>, vector<16x128xf32>
    tpu.vector_store %arg2[%c0_3, %c0_4], %7 {strides = array<i32>} : memref<16x128xf32, #tpu.memory_space<vmem>>, vector<16x128xf32>,
    return
  }
  func.func @transform_0(%arg0: i32) -> (i32, i32) {
    %c0_i32 = arith.constant 0 : i32
    %c0_i32_0 = arith.constant 0 : i32
    return %arg0, %c0_i32 : i32, i32
  }
  func.func @transform_1(%arg0: i32) -> (i32, i32) {
    %c0_i32 = arith.constant 0 : i32
    %c0_i32_0 = arith.constant 0 : i32
    return %arg0, %c0_i32 : i32, i32
  }
}

</mosaic_0001>

<bundles_post_ra>
// kernel: tpu_custom_call.1
= control target key start
LH: loop header
LB: loop body
LE: loop exit
PB: predicated region body
PF: predicated region fallthrough
CT: control target
= control target key end

     0   :  { %6 = vsyncpa [#allocation3], 0  ;;  %s136_s0 = inlined_call_operand.hbm [shape: f32[16,128], index: 0, kind: input, shape index: {}]   ;;  %s137_s1 = inlined_call_operand.hbm [shape: f32[16,128], index: 1, kind: output, shape index: {}]  }
   0x1   :  { %7 = vsyncpa [#allocation4], 0  ;;  %s12_s8 = sshll.u32 %s136_s0, 4  ;;  %s116_s9 = smov [#allocation2]   ;;  %s13_s8 = int_to_ptr.hbm [resolvable:$true] %s12_s8 }
   0x2   :  { %s14_s10 = sshll.u32 %s116_s9, 4  ;;  %s117_s11 = smov 128   ;;  %s15_s10 = int_to_ptr.vmem [resolvable:$true] %s14_s10 }
   0x3   :  { %s118_s12 = smov 8  }
   0x4   :  { %20 = dma.hbm_to_vmem [thread:$0]  %s13_s8, 256, %s15_s10, [#allocation3], %s117_s11, %s117_s11, %s118_s12  }
   0x5   :  { %112 = dma.done.wait [#allocation3], 256  }
   0x6   :  { %113 = vsyncadd [#allocation3], 4294967040  ;;  %v25_v0 = vld [vmem:[#allocation2] sm:$0xff]  ;;  %v26_v1 = vld [vmem:[#allocation2 + $0x8] sm:$0xff]  ;;  %s119_s13 = smov [#allocation5]   ;;  %s43_s16 = sshll.u32 %s137_s1, 4  ;;  %s44_s16 = int_to_ptr.hbm [resolvable:$true] %s43_s16 }
   0x7   :  { %v27_v2 = vmul.f32 0.5, %v25_v0  ;;  %v28_v3 = vmul.f32 0.5, %v26_v1  ;;  %s41_s0 = sshll.u32 %s119_s13, 4  ;;  %s42_s0 = int_to_ptr.vmem [resolvable:$true] %s41_s0 }
   0x9   :  { %60 = vtanh.f32 %v27_v2 }
   0xa   :  { %62 = vtanh.f32 %v28_v3 }
   0xf   :  { %v61_v4 = vpop.eup %60 }
  0x10   :  { %v63_v5 = vpop.eup %62  ;;  %v31_v6 = vmul.f32 0.5, %v61_v4 }
  0x11   :  { %v32_v7 = vmul.f32 0.5, %v63_v5 }
  0x12   :  { %v33_v8 = vadd.f32 0.5, %v31_v6 }
  0x13   :  { %v34_v9 = vadd.f32 0.5, %v32_v7 }
  0x14   :  { %35 = vst [vmem:[#allocation5] sm:$0xff] %v33_v8 }
  0x15   :  { %36 = vst [vmem:[#allocation5 + $0x8] sm:$0xff] %v34_v9 }
  0x16   :  { %49 = dma.vmem_to_hbm [thread:$0]  %s42_s0, 256, %s44_s16, [#allocation4], %s117_s11, %s117_s11, %s118_s12  }
  0x17   :  { %114 = dma.done.wait [#allocation4], 256  }
  0x18   :  { %115 = vsyncadd [#allocation4], 4294967040 }
  0x19   :  { %54 = vsyncpa [#allocation3], 1 }
  0x1a   :  { %55 = vsyncpa [#allocation4], 1 }

</bundles_post_ra>
